<compile_context>
chip_gen: v7x
topology: tpu7x:2x2x1
jax: 0.10.0
libtpu: 0.0.40
codegen_flags: <defaults>
</compile_context>

<pallas_src>
import jax
import jax.numpy as jnp
from jax.experimental import pallas as pl
from jax.experimental.pallas import tpu as pltpu

BN_EPS = 1e-5


def _round_up(x, m):
    return (x + m - 1) // m * m


def classblock_kernel(x_ref, w1_ref, gamma_ref, beta_ref, w2_ref, b2_ref,
                      logits_ref, f_ref, hbn_ref):
    # --- step 0: bottleneck linear + BatchNorm1d (training-mode batch statistics) ---
    @pl.when(pl.program_id(0) == 0)
    def _():
        # bf16 operands, f32 accumulation on the MXU.
        h = jnp.dot(x_ref[...], w1_ref[...], preferred_element_type=jnp.float32)
        # NOTE: the Linear bias b1 is intentionally omitted: with per-batch statistics it is
        # added to h and then exactly subtracted by the batch mean (mathematical no-op).
        mean = jnp.mean(h, axis=0, keepdims=True)          # (1, NB)
        hc = h - mean                                      # centered, computed once
        var = jnp.mean(hc * hc, axis=0, keepdims=True)     # biased variance (PyTorch training)
        h_bn = hc * jax.lax.rsqrt(var + BN_EPS) * gamma_ref[...] + beta_ref[...]
        f_ref[...] = h_bn.astype(f_ref.dtype)              # feature output (full precision)
        hbn_ref[...] = h_bn.astype(hbn_ref.dtype)          # bf16 copy for the classifier MXU

    # --- every step: classifier tile  (B, NB) @ (NB, TILE_C) + (1, TILE_C) ---
    logits = jnp.dot(hbn_ref[...], w2_ref[...],
                     preferred_element_type=jnp.float32) + b2_ref[...]
    logits_ref[...] = logits.astype(logits_ref.dtype)


def class_block_forward(x, w1, b1, gamma, beta, w2, b2, *, matmul_dtype=jnp.bfloat16):
    """x: (B, input_dim). w1: (num_bottleneck, input_dim), w2: (class_num, num_bottleneck)
    in PyTorch (out, in) layout. Returns (logits, f)."""
    del b1  # cancels exactly against the batch mean of training-mode BatchNorm1d
    B, D = x.shape
    NB = w1.shape[0]
    C = w2.shape[0]

    # Lane-dense padding: NB and C padded to multiples of 128 (zeros), sliced off at the end.
    NB_pad = _round_up(NB, 128)
    TILE_C = min(512, _round_up(C, 128))
    C_pad = _round_up(C, TILE_C)
    n_ct = C_pad // TILE_C

    f32 = jnp.float32
    # Weights pre-transposed to (in, out) and cast to bf16 once in the wrapper.
    w1_t = jnp.zeros((D, NB_pad), matmul_dtype).at[:, :NB].set(w1.T.astype(matmul_dtype))
    w2_t = jnp.zeros((NB_pad, C_pad), matmul_dtype).at[:NB, :C].set(w2.T.astype(matmul_dtype))
    gamma_p = jnp.zeros((1, NB_pad), f32).at[0, :NB].set(gamma.astype(f32))
    beta_p = jnp.zeros((1, NB_pad), f32).at[0, :NB].set(beta.astype(f32))
    b2_p = jnp.zeros((1, C_pad), f32).at[0, :C].set(b2.astype(f32))
    x_mm = x.astype(matmul_dtype)

    # --- VMEM budget (double-buffered inputs/outputs + scratch + f32 intermediates) ---
    mm_isz = jnp.dtype(matmul_dtype).itemsize
    out_isz = jnp.dtype(x.dtype).itemsize
    x_b = B * D * mm_isz
    w1_b = D * NB_pad * mm_isz
    aff_b = 2 * NB_pad * 4
    w2_tile_b = NB_pad * TILE_C * mm_isz
    b2_tile_b = TILE_C * 4
    f_b = B * NB_pad * out_isz
    lg_tile_b = B * TILE_C * out_isz
    scratch_b = B * NB_pad * mm_isz
    resident = (2 * (x_b + w1_b + aff_b + w2_tile_b + b2_tile_b + f_b + lg_tile_b)
                + scratch_b + 4 * B * NB_pad * 4)
    vmem_limit = int(min(max(resident + (2 << 20), 16 << 20), 48 << 20))

    cost = pl.CostEstimate(
        flops=2 * B * D * NB_pad + 2 * B * NB_pad * C_pad,
        transcendentals=0,
        bytes_accessed=(x_b + w1_b + aff_b + NB_pad * C_pad * mm_isz + C_pad * 4
                        + f_b + B * C_pad * out_isz),
    )

    grid_spec = pltpu.PrefetchScalarGridSpec(
        num_scalar_prefetch=0,
        grid=(n_ct,),
        in_specs=[
            pl.BlockSpec((B, D), lambda j: (0, 0)),            # x          (resident)
            pl.BlockSpec((D, NB_pad), lambda j: (0, 0)),       # w1^T       (resident)
            pl.BlockSpec((1, NB_pad), lambda j: (0, 0)),       # gamma      (resident)
            pl.BlockSpec((1, NB_pad), lambda j: (0, 0)),       # beta       (resident)
            pl.BlockSpec((NB_pad, TILE_C), lambda j: (0, j)),  # w2^T tile  (pipelined)
            pl.BlockSpec((1, TILE_C), lambda j: (0, j)),       # b2 tile    (pipelined)
        ],
        out_specs=[
            pl.BlockSpec((B, TILE_C), lambda j: (0, j)),       # logits tile (lane-dense)
            pl.BlockSpec((B, NB_pad), lambda j: (0, 0)),       # f (written once, flushed at end)
        ],
        scratch_shapes=[pltpu.VMEM((B, NB_pad), matmul_dtype)],
    )

    logits_pad, f_pad = pl.pallas_call(
        classblock_kernel,
        out_shape=(
            jax.ShapeDtypeStruct((B, C_pad), x.dtype),
            jax.ShapeDtypeStruct((B, NB_pad), x.dtype),
        ),
        grid_spec=grid_spec,
        compiler_params=pltpu.CompilerParams(
            # class-axis iterations reuse the step-0 scratch -> must be "arbitrary"
            dimension_semantics=("arbitrary",),
            vmem_limit_bytes=vmem_limit,
        ),
        cost_estimate=cost,
    )(x_mm, w1_t, gamma_p, beta_p, w2_t, b2_p)

    # TODO(synk): inference-mode BN (running_mean/running_var) and huge-batch two-phase BN
    # (batch-tiled sum / sum-of-squares) are not implemented; this matches a freshly
    # constructed module in training mode, as in the reference spec.
    return logits_pad[:, :C], f_pad[:, :NB]


def init_params(key, input_dim, num_bottleneck, class_num, dtype=jnp.float32):
    k1, k2, k3 = jax.random.split(key, 3)
    # kaiming_normal_(a=0, mode='fan_out') on Linear weight (out, in): std = sqrt(2 / out)
    w1 = jax.random.normal(k1, (num_bottleneck, input_dim), dtype) * jnp.sqrt(
        2.0 / num_bottleneck)
    b1 = jnp.zeros((num_bottleneck,), dtype)
    # BatchNorm1d: weight ~ N(1, 0.02), bias = 0
    gamma = 1.0 + 0.02 * jax.random.normal(k2, (num_bottleneck,), dtype)
    beta = jnp.zeros((num_bottleneck,), dtype)
    # classifier Linear: weight ~ N(0, 0.001), bias = 0
    w2 = 0.001 * jax.random.normal(k3, (class_num, num_bottleneck), dtype)
    b2 = jnp.zeros((class_num,), dtype)
    return w1, b1, gamma, beta, w2, b2


if __name__ == "__main__":
    key = jax.random.PRNGKey(0)
    kx, kp = jax.random.split(key)

    B, input_dim, num_bottleneck, class_num = 8, 32, 128, 16
    x = jax.random.normal(kx, (B, input_dim), jnp.float32)
    params = init_params(kp, input_dim, num_bottleneck, class_num)

    logits, f = class_block_forward(x, *params)
    jax.block_until_ready((logits, f))

    # Reference in plain JAX with identical bf16-operand / f32-accumulation math.
    w1, b1, gamma, beta, w2, b2 = params
    bf = jnp.bfloat16
    h = jnp.dot(x.astype(bf), w1.T.astype(bf), preferred_element_type=jnp.float32) + b1
    mean = h.mean(axis=0, keepdims=True)
    hc = h - mean
    var = (hc * hc).mean(axis=0, keepdims=True)
    f_ref = hc * jax.lax.rsqrt(var + BN_EPS) * gamma + beta
    logits_ref = jnp.dot(f_ref.astype(bf), w2.T.astype(bf),
                         preferred_element_type=jnp.float32) + b2

    assert logits.shape == (B, class_num) and f.shape == (B, num_bottleneck)
    assert jnp.allclose(f, f_ref, atol=2e-2, rtol=2e-2), float(jnp.max(jnp.abs(f - f_ref)))
    assert jnp.allclose(logits, logits_ref, atol=2e-2, rtol=2e-2), float(
        jnp.max(jnp.abs(logits - logits_ref)))

    print("KERNEL_OK")
</pallas_src>

<mosaic_0001>
module attributes {stable_mosaic.version = 11 : i64} {
  func.func @classblock_kernel(%arg0: i32, %arg1: memref<8x32xbf16, #tpu.memory_space<vmem>>, %arg2: memref<32x128xbf16, #tpu.memory_space<vmem>>, %arg3: memref<1x128xf32, #tpu.memory_space<vmem>>, %arg4: memref<1x128xf32, #tpu.memory_space<vmem>>, %arg5: memref<128x128xbf16, #tpu.memory_space<vmem>>, %arg6: memref<1x128xf32, #tpu.memory_space<vmem>>, %arg7: memref<8x128xf32, #tpu.memory_space<vmem>>, %arg8: memref<8x128xf32, #tpu.memory_space<vmem>>, %arg9: memref<8x128xbf16, #tpu.memory_space<vmem>>) attributes {dimension_semantics = [#tpu.dimension_semantics<arbitrary>], iteration_bounds = array<i64: 1>, scalar_prefetch = 0 : i64, scratch_operands = 1 : i64, tpu.core_type = #tpu.core_type<tc>, window_params = [{pipeline_mode = #tpu.pipeline_mode<synchronous>, transform_indices = @transform_0, window_bounds = array<i64: 8, 32>}, {pipeline_mode = #tpu.pipeline_mode<synchronous>, transform_indices = @transform_1, window_bounds = array<i64: 32, 128>}, {pipeline_mode = #tpu.pipeline_mode<synchronous>, transform_indices = @transform_2, window_bounds = array<i64: 1, 128>}, {pipeline_mode = #tpu.pipeline_mode<synchronous>, transform_indices = @transform_3, window_bounds = array<i64: 1, 128>}, {transform_indices = @transform_4, window_bounds = array<i64: 128, 128>}, {transform_indices = @transform_5, window_bounds = array<i64: 1, 128>}, {transform_indices = @transform_6, window_bounds = array<i64: 8, 128>}, {pipeline_mode = #tpu.pipeline_mode<synchronous>, transform_indices = @transform_7, window_bounds = array<i64: 8, 128>}]} {
    %c0_i32 = arith.constant 0 : i32
    %0 = arith.cmpi eq, %arg0, %c0_i32 : i32
    %1 = arith.extui %0 : i1 to i32
    %c0_i32_0 = arith.constant 0 : i32
    %2 = arith.cmpi ne, %1, %c0_i32_0 : i32
    scf.if %2 {
      %c0_8 = arith.constant 0 : index
      %c0_9 = arith.constant 0 : index
      %10 = vector.load %arg1[%c0_8, %c0_9] : memref<8x32xbf16, #tpu.memory_space<vmem>>, vector<8x32xbf16>
      %c0_10 = arith.constant 0 : index
      %c0_11 = arith.constant 0 : index
      %11 = vector.load %arg2[%c0_10, %c0_11] : memref<32x128xbf16, #tpu.memory_space<vmem>>, vector<32x128xbf16>
      %cst_12 = arith.constant dense<0.000000e+00> : vector<8x128xf32>
      %12 = tpu.matmul %10, %11, %cst_12 {dimension_numbers = #tpu.dot_dimension_numbers<[1], [0], [0], [1], [0, 0, 1, 1], [], []>} : vector<8x32xbf16>, vector<32x128xbf16>, vector<8x128xf32> -> vector<8x128xf32>
      %cst_13 = arith.constant dense<0.000000e+00> : vector<128xf32>
      %13 = vector.multi_reduction <add>, %12, %cst_13 [0] : vector<8x128xf32> to vector<128xf32>
      %14 = vector.shape_cast %13 : vector<128xf32> to vector<1x128xf32>
      %cst_14 = arith.constant 8.000000e+00 : f32
      %15 = vector.broadcast %cst_14 : f32 to vector<1x128xf32>
      %16 = arith.divf %14, %15 : vector<1x128xf32>
      %17 = vector.broadcast %16 : vector<1x128xf32> to vector<8x128xf32>
      %18 = arith.subf %12, %17 : vector<8x128xf32>
      %19 = arith.mulf %18, %18 : vector<8x128xf32>
      %cst_15 = arith.constant dense<0.000000e+00> : vector<128xf32>
      %20 = vector.multi_reduction <add>, %19, %cst_15 [0] : vector<8x128xf32> to vector<128xf32>
      %21 = vector.shape_cast %20 : vector<128xf32> to vector<1x128xf32>
      %cst_16 = arith.constant 8.000000e+00 : f32
      %22 = vector.broadcast %cst_16 : f32 to vector<1x128xf32>
      %23 = arith.divf %21, %22 : vector<1x128xf32>
      %cst_17 = arith.constant 9.99999974E-6 : f32
      %24 = vector.broadcast %cst_17 : f32 to vector<1x128xf32>
      %25 = arith.addf %23, %24 : vector<1x128xf32>
      %26 = math.rsqrt %25 : vector<1x128xf32>
      %27 = vector.broadcast %26 : vector<1x128xf32> to vector<8x128xf32>
      %28 = arith.mulf %18, %27 : vector<8x128xf32>
      %c0_18 = arith.constant 0 : index
      %c0_19 = arith.constant 0 : index
      %29 = vector.load %arg3[%c0_18, %c0_19] : memref<1x128xf32, #tpu.memory_space<vmem>>, vector<1x128xf32>
      %30 = vector.broadcast %29 : vector<1x128xf32> to vector<8x128xf32>
      %31 = arith.mulf %28, %30 : vector<8x128xf32>
      %c0_20 = arith.constant 0 : index
      %c0_21 = arith.constant 0 : index
      %32 = vector.load %arg4[%c0_20, %c0_21] : memref<1x128xf32, #tpu.memory_space<vmem>>, vector<1x128xf32>
      %33 = vector.broadcast %32 : vector<1x128xf32> to vector<8x128xf32>
      %34 = arith.addf %31, %33 : vector<8x128xf32>
      %c0_22 = arith.constant 0 : index
      %c0_23 = arith.constant 0 : index
      %35 = vector.load %arg8[%c0_22, %c0_23] : memref<8x128xf32, #tpu.memory_space<vmem>>, vector<8x128xf32>
      tpu.vector_store %arg8[%c0_22, %c0_23], %34 {strides = array<i32>} : memref<8x128xf32, #tpu.memory_space<vmem>>, vector<8x128xf32>,
      %36 = arith.truncf %34 : vector<8x128xf32> to vector<8x128xbf16>
      %c0_24 = arith.constant 0 : index
      %c0_25 = arith.constant 0 : index
      %37 = vector.load %arg9[%c0_24, %c0_25] : memref<8x128xbf16, #tpu.memory_space<vmem>>, vector<8x128xbf16>
      tpu.vector_store %arg9[%c0_24, %c0_25], %36 {strides = array<i32>} : memref<8x128xbf16, #tpu.memory_space<vmem>>, vector<8x128xbf16>,
    } else {
    }
    %c0 = arith.constant 0 : index
    %c0_1 = arith.constant 0 : index
    %3 = vector.load %arg9[%c0, %c0_1] : memref<8x128xbf16, #tpu.memory_space<vmem>>, vector<8x128xbf16>
    %c0_2 = arith.constant 0 : index
    %c0_3 = arith.constant 0 : index
    %4 = vector.load %arg5[%c0_2, %c0_3] : memref<128x128xbf16, #tpu.memory_space<vmem>>, vector<128x128xbf16>
    %cst = arith.constant dense<0.000000e+00> : vector<8x128xf32>
    %5 = tpu.matmul %3, %4, %cst {dimension_numbers = #tpu.dot_dimension_numbers<[1], [0], [0], [1], [0, 0, 1, 1], [], []>} : vector<8x128xbf16>, vector<128x128xbf16>, vector<8x128xf32> -> vector<8x128xf32>
    %c0_4 = arith.constant 0 : index
    %c0_5 = arith.constant 0 : index
    %6 = vector.load %arg6[%c0_4, %c0_5] : memref<1x128xf32, #tpu.memory_space<vmem>>, vector<1x128xf32>
    %7 = vector.broadcast %6 : vector<1x128xf32> to vector<8x128xf32>
    %8 = arith.addf %5, %7 : vector<8x128xf32>
    %c0_6 = arith.constant 0 : index
    %c0_7 = arith.constant 0 : index
    %9 = vector.load %arg7[%c0_6, %c0_7] : memref<8x128xf32, #tpu.memory_space<vmem>>, vector<8x128xf32>
    tpu.vector_store %arg7[%c0_6, %c0_7], %8 {strides = array<i32>} : memref<8x128xf32, #tpu.memory_space<vmem>>, vector<8x128xf32>,
    return
  }
  func.func @transform_0(%arg0: i32) -> (i32, i32) {
    %c0_i32 = arith.constant 0 : i32
    %c0_i32_0 = arith.constant 0 : i32
    %c0_i32_1 = arith.constant 0 : i32
    return %c0_i32, %c0_i32_0 : i32, i32
  }
  func.func @transform_1(%arg0: i32) -> (i32, i32) {
    %c0_i32 = arith.constant 0 : i32
    %c0_i32_0 = arith.constant 0 : i32
    %c0_i32_1 = arith.constant 0 : i32
    return %c0_i32, %c0_i32_0 : i32, i32
  }
  func.func @transform_2(%arg0: i32) -> (i32, i32) {
    %c0_i32 = arith.constant 0 : i32
    %c0_i32_0 = arith.constant 0 : i32
    %c0_i32_1 = arith.constant 0 : i32
    return %c0_i32, %c0_i32_0 : i32, i32
  }
  func.func @transform_3(%arg0: i32) -> (i32, i32) {
    %c0_i32 = arith.constant 0 : i32
    %c0_i32_0 = arith.constant 0 : i32
    %c0_i32_1 = arith.constant 0 : i32
    return %c0_i32, %c0_i32_0 : i32, i32
  }
  func.func @transform_4(%arg0: i32) -> (i32, i32) {
    %c0_i32 = arith.constant 0 : i32
    %c0_i32_0 = arith.constant 0 : i32
    return %c0_i32, %arg0 : i32, i32
  }
  func.func @transform_5(%arg0: i32) -> (i32, i32) {
    %c0_i32 = arith.constant 0 : i32
    %c0_i32_0 = arith.constant 0 : i32
    return %c0_i32, %arg0 : i32, i32
  }
  func.func @transform_6(%arg0: i32) -> (i32, i32) {
    %c0_i32 = arith.constant 0 : i32
    %c0_i32_0 = arith.constant 0 : i32
    return %c0_i32, %arg0 : i32, i32
  }
  func.func @transform_7(%arg0: i32) -> (i32, i32) {
    %c0_i32 = arith.constant 0 : i32
    %c0_i32_0 = arith.constant 0 : i32
    %c0_i32_1 = arith.constant 0 : i32
    return %c0_i32, %c0_i32_0 : i32, i32
  }
}

</mosaic_0001>

<bundles_post_ra>
// kernel: tpu_custom_call.1
= control target key start
LH: loop header
LB: loop body
LE: loop exit
PB: predicated region body
PF: predicated region fallthrough
CT: control target
= control target key end

     0   :  { %13 = vsyncpa [#allocation4], 0  ;;  %s631_s0 = inlined_call_operand.hbm [shape: bf16[8,32], index: 0, kind: input, shape index: {}]   ;;  %s632_s1 = inlined_call_operand.hbm [shape: bf16[32,128], index: 1, kind: input, shape index: {}]   ;;  %s633_s2 = inlined_call_operand.vmem [shape: f32[1,128], index: 2, kind: input, shape index: {}]   ;;  %s634_s3 = inlined_call_operand.vmem [shape: f32[1,128], index: 3, kind: input, shape index: {}]   ;;  %s635_s4 = inlined_call_operand.hbm [shape: bf16[128,128], index: 4, kind: input, shape index: {}]   ;;  %s636_s5 = inlined_call_operand.vmem [shape: f32[1,128], index: 5, kind: input, shape index: {}]   ;;  %s637_s6 = inlined_call_operand.hbm [shape: f32[8,128], index: 6, kind: output, shape index: {0}]   ;;  %s638_s7 = inlined_call_operand.hbm [shape: f32[8,128], index: 7, kind: output, shape index: {1}]  }
   0x1   :  { %14 = vsyncpa [#allocation7], 0 }
   0x2   :  { %15 = vsyncpa [#allocation5], 0 }
   0x3   :  { %16 = vsyncpa [#allocation11], 0  ;;  %s507_s24 = smov [#allocation6]   ;;  %s389_s28 = scalar_lea.hbm %s632_s1, 256 }
   0x4   :  { %s32_s25 = sshll.u32 %s507_s24, 4  ;;  %p390_p0 = scmp.ne.s32.totalorder %s632_s1, %s389_s28  ;;  %s33_s25 = int_to_ptr.vmem [resolvable:$true] %s32_s25 }
   0x5   :  { %p393_p1 = scmp.lt.u32.totalorder %s389_s28, %s632_s1 }
   0x7   :  { %p395_p2 = pnand %p393_p1, %p390_p0 }
   0x9   :  { %398 = shalt.err (!%p395_p2)
}
   0xa   :  { %s399_s10 = scalar_lea.vmem %s33_s25, 256  ;;  %p404_p4 = scmp.lt.s32.totalorder %s33_s25, %s33_s25 }
   0xb   :  { %p400_p3 = scmp.ne.s32.totalorder %s33_s25, %s399_s10  ;;  %p405_p5 = scmp.lt.s32.totalorder %s399_s10, %s399_s10 }
   0xd   :  { %p406_p6 = por %p405_p5, %p404_p4 }
   0xf   :  { %p407_p7 = pnand %p406_p6, %p400_p3 }
  0x11   :  { %410 = shalt.err (!%p407_p7)
}
  0x12   :  { %s508_s11 = smov 64   ;;  %s509_s12 = smov 4  }
  0x13   :  { %38 = dma.hbm_to_vmem [thread:$0]  %s632_s1, 256, %s33_s25, [#allocation7], %s508_s11, %s508_s11, %s509_s12  }
  0x14   :  { %s510_s15 = smov [#allocation3]   ;;  %s511_s17 = smov [#allocation8]  }
  0x15   :  { %s23_s16 = sshll.u32 %s510_s15, 4  ;;  %s48_s18 = sshll.u32 %s511_s17, 4  ;;  %s24_s16 = int_to_ptr.vmem [resolvable:$true] %s23_s16  ;;  %s49_s18 = int_to_ptr.vmem [resolvable:$true] %s48_s18 }
  0x16   :  { %s411_s21 = scalar_lea.hbm %s631_s0, 64 }
  0x17   :  { %p412_p8 = scmp.ne.s32.totalorder %s631_s0, %s411_s21  ;;  %p415_p9 = scmp.lt.u32.totalorder %s411_s21, %s631_s0 }
  0x19   :  { %p417_p10 = pnand %p415_p9, %p412_p8 }
  0x1b   :  { %420 = shalt.err (!%p417_p10)
}
  0x1c   :  { %s421_s1 = scalar_lea.vmem %s24_s16, 64  ;;  %p426_p12 = scmp.lt.s32.totalorder %s24_s16, %s24_s16 }
  0x1d   :  { %p422_p11 = scmp.ne.s32.totalorder %s24_s16, %s421_s1  ;;  %p427_p13 = scmp.lt.s32.totalorder %s421_s1, %s421_s1 }
  0x1f   :  { %p428_p0 = por %p427_p13, %p426_p12 }
  0x21   :  { %p429_p1 = pnand %p428_p0, %p422_p11 }
  0x23   :  { %432 = shalt.err (!%p429_p1)
}
  0x24   :  { %26 = dma.hbm_to_vmem [thread:$0]  %s631_s0, 64, %s24_s16, [#allocation4]  }
  0x25   :  { %s433_s30 = scalar_lea.hbm %s635_s4, 1024 }
  0x26   :  { %p434_p2 = scmp.ne.s32.totalorder %s635_s4, %s433_s30  ;;  %p437_p3 = scmp.lt.u32.totalorder %s433_s30, %s635_s4 }
  0x28   :  { %p439_p4 = pnand %p437_p3, %p434_p2 }
  0x2a   :  { %442 = shalt.err (!%p439_p4)
}
  0x2b   :  { %s443_s14 = scalar_lea.vmem %s49_s18, 1024  ;;  %p448_p6 = scmp.lt.s32.totalorder %s49_s18, %s49_s18 }
  0x2c   :  { %p444_p5 = scmp.ne.s32.totalorder %s49_s18, %s443_s14  ;;  %p449_p7 = scmp.lt.s32.totalorder %s443_s14, %s443_s14 }
  0x2e   :  { %p450_p8 = por %p449_p7, %p448_p6 }
  0x30   :  { %p451_p9 = pnand %p450_p8, %p444_p5 }
  0x32   :  { %454 = shalt.err (!%p451_p9)
}
  0x33   :  { %54 = dma.hbm_to_vmem [thread:$0]  %s635_s4, 1024, %s49_s18, [#allocation7], %s508_s11, %s508_s11, %s509_s12  }
  0x34   :  { %499 = dma.done.wait [#allocation4], 64  }
  0x35   :  { %500 = vsyncadd [#allocation4], 4294967232 }
  0x36   :  { %501 = dma.done.wait [#allocation7], 1280  }
  0x37   :  { %502 = vsyncadd [#allocation7], 4294966016  ;;  %v512_v0 = vmov 0.0   ;;  %vm513_vm0 = vmmov 0   ;;  %v377_v1 = vld [vmem:[#allocation6] sm:$0xff]   ;;  %v378_v2 = vld [vmem:[#allocation6 + $0x8] sm:$0xff]  }
  0x38   :  { %340 = vmatprep.subr.bf16.mxu0 %v512_v0  ;;  %344 = vmatprep.mubr.msk.bf16.mxu0 %vm513_vm0, %v512_v0  ;;  %vm88_vm1 = vcmask 261120   ;;  %v71_v3 = vld [vmem:[#allocation3] sm:$0xf]  ;;  %v379_v4 = vld [vmem:[#allocation8] sm:$0xff]   ;;  %v381_v6 = vld [vmem:[#allocation8 + $0x10] sm:$0xff]   ;;  %s514_s17 = smov [#allocation10]  }
  0x39   :  { %348 = vmatprep.subr.bf16.mxu1 %v512_v0  ;;  %364 = vmatprep.mubr.msk.bf16.mxu1 %vm513_vm0, %v512_v0  ;;  %v380_v5 = vld [vmem:[#allocation8 + $0x8] sm:$0xff]   ;;  %v382_v7 = vld [vmem:[#allocation8 + $0x18] sm:$0xff]   ;;  %v383_v8 = vld [vmem:[#allocation8 + $0x20] sm:$0xff]   ;;  %s300_s18 = sshll.u32 %s514_s17, 4  ;;  %s301_s18 = int_to_ptr.vmem [resolvable:$true] %s300_s18 }
  0x3a   :  { %341 = vmatpush3.bf16.msra.mxu0 %v377_v1  ;;  %349 = vmatpush3.bf16.msra.mxu1 %v379_v4  ;;  %v384_v9 = vld [vmem:[#allocation8 + $0x28] sm:$0xff]   ;;  %v385_v10 = vld [vmem:[#allocation8 + $0x30] sm:$0xff]   ;;  %v386_v11 = vld [vmem:[#allocation8 + $0x38] sm:$0xff]   ;;  %s455_s19 = scalar_lea.vmem %s301_s18, 128  ;;  %p460_p11 = scmp.lt.s32.totalorder %s301_s18, %s301_s18 }
  0x3b   :  { %342 = vmatprep.subr.bf16.mxu0 %v512_v0  ;;  %350 = vmatprep.subr.bf16.mxu1 %v512_v0  ;;  %v317_v34 = vld [vmem:[%s633_s2] ss:$0 sm:$0xff]  ;;  %p456_p10 = scmp.ne.s32.totalorder %s301_s18, %s455_s19  ;;  %p461_p12 = scmp.lt.s32.totalorder %s455_s19, %s455_s19 }
  0x3c   :  { %v318_v36 = vld [vmem:[%s634_s3] ss:$0 sm:$0xff] }
  0x3d   :  { %p462_p13 = por %p461_p12, %p460_p11 }
  0x3e   :  { %343 = vmatpush3.bf16.msra.mxu0 %v378_v2  ;;  %351 = vmatpush3.bf16.msra.mxu1 %v380_v5 }
  0x3f   :  { %352 = vmatprep.subr.bf16.mxu1 %v512_v0  ;;  %p463_p0 = pnand %p462_p13, %p456_p10 }
  0x41   :  { %345 = vmatmul.mubr.msk.bf16.vlgmr.msra.gmra.mrb[0].mxu0 %vm88_vm1, %v71_v3 }
  0x42   :  { %353 = vmatpush3.bf16.msra.mxu1 %v381_v6 }
  0x43   :  { %354 = vmatprep.subr.bf16.mxu1 %v512_v0 }
  0x46   :  { %355 = vmatpush3.bf16.msra.mxu1 %v382_v7 }
  0x47   :  { %356 = vmatprep.subr.bf16.mxu1 %v512_v0 }
  0x4a   :  { %357 = vmatpush3.bf16.msra.mxu1 %v383_v8 }
  0x4b   :  { %358 = vmatprep.subr.bf16.mxu1 %v512_v0 }
  0x4e   :  { %359 = vmatpush3.bf16.msra.mxu1 %v384_v9 }
  0x4f   :  { %360 = vmatprep.subr.bf16.mxu1 %v512_v0 }
  0x52   :  { %361 = vmatpush3.bf16.msra.mxu1 %v385_v10 }
  0x53   :  { %362 = vmatprep.subr.bf16.mxu1 %v512_v0 }
  0x56   :  { %363 = vmatpush3.bf16.msra.mxu1 %v386_v11 }
 0x114   :  { %v126_v12 = vpop.f32.mrb[0].mxu0 }
 0x115   :  { %v132_v13 = vrot.slane %v126_v12, 4  ;;  %v346_v14 = vpop.f32.mrb[1].mxu0 }
 0x116   :  { %v129_v15 = vpop.f32.mrb[2].mxu0 }
 0x117   :  { %v133_v16 = vadd.f32 %v132_v13, %v126_v12  ;;  %v347_v17 = vpop.f32.mrb[3].mxu0 }
 0x119   :  { %v134_v18 = vrot.slane %v133_v16, 2 }
 0x11b   :  { %v135_v19 = vadd.f32 %v134_v18, %v133_v16 }
 0x11d   :  { %v136_v20 = vrot.slane %v135_v19, 1 }
 0x11f   :  { %v137_v21 = vadd.f32 %v136_v20, %v135_v19 }
 0x121   :  { %v139_v22 = vmul.f32 0.125, %v137_v21 }
 0x123   :  { %v140_v23 = vsub.f32 %v126_v12, %v139_v22 }
 0x125   :  { %v141_v24 = vmul.f32 %v140_v23, %v140_v23 }
 0x127   :  { %v142_v25 = vrot.slane %v141_v24, 4 }
 0x129   :  { %v143_v26 = vadd.f32 %v142_v25, %v141_v24 }
 0x12b   :  { %v144_v27 = vrot.slane %v143_v26, 2 }
 0x12d   :  { %v145_v28 = vadd.f32 %v144_v27, %v143_v26 }
 0x12f   :  { %v146_v29 = vrot.slane %v145_v28, 1 }
 0x131   :  { %v147_v30 = vadd.f32 %v146_v29, %v145_v28 }
 0x133   :  { %v148_v31 = vmul.f32 0.125, %v147_v30 }
 0x135   :  { %v149_v32 = vadd.f32 1e-05, %v148_v31 }
 0x137   :  { %387 = vrsqrt.f32 %v149_v32 }
 0x141   :  { %v388_v33 = vpop.eup %387 }
 0x142   :  { %v151_v35 = vmul.f32 %v388_v33, %v140_v23 }
 0x144   :  { %v159_v37 = vmul.f32 %v317_v34, %v151_v35 }
 0x146   :  { %v167_v38 = vadd.f32 %v318_v36, %v159_v37 }
 0x148   :  { %v169_v39 = vpack.c.bf16 %v167_v38, %v167_v38  ;;  %168 = vst [vmem:[#allocation10] sm:$0xff] %v167_v38 }
 0x14a   :  { %170 = vst [vmem:[#allocation2] sm:$0xf] %v169_v39 }
 0x151   :  { %v171_v40 = vld [vmem:[#allocation2] sm:$0xf] }
 0x152   :  { %365 = vmatmul.mubr.bf16.vlgmr.msra.gmra.mrb[0].mxu1 %v171_v40 }
 0x153   :  { %466 = shalt.err (!%p463_p0)
}
 0x154   :  { %s467_s3 = scalar_lea.hbm %s638_s7, 128 }
 0x155   :  { %p468_p1 = scmp.ne.s32.totalorder %s638_s7, %s467_s3  ;;  %p471_p2 = scmp.lt.u32.totalorder %s467_s3, %s638_s7 }
 0x157   :  { %p473_p3 = pnand %p471_p2, %p468_p1 }
 0x159   :  { %476 = shalt.err (!%p473_p3)
}
 0x15a   :  { %303 = dma.vmem_to_hbm [thread:$0]  %s301_s18, 128, %s638_s7, [#allocation11]   ;;  %v319_v41 = vld [vmem:[%s636_s5] ss:$0 sm:$0xff] }
 0x15b   :  { %s515_s28 = smov [#allocation9]  }
 0x15c   :  { %s290_s29 = sshll.u32 %s515_s28, 4  ;;  %s291_s29 = int_to_ptr.vmem [resolvable:$true] %s290_s29 }
 0x15d   :  { %s477_s30 = scalar_lea.vmem %s291_s29, 128  ;;  %p482_p5 = scmp.lt.s32.totalorder %s291_s29, %s291_s29 }
 0x15e   :  { %p478_p4 = scmp.ne.s32.totalorder %s291_s29, %s477_s30  ;;  %p483_p6 = scmp.lt.s32.totalorder %s477_s30, %s477_s30 }
 0x160   :  { %p484_p7 = por %p483_p6, %p482_p5 }
 0x162   :  { %p485_p8 = pnand %p484_p7, %p478_p4 }
 0x225   :  { %v277_v42 = vpop.f32.mrb[0].mxu1 }
 0x226   :  { %v278_v43 = vadd.f32 %v319_v41, %v277_v42  ;;  %v366_v44 = vpop.f32.mrb[1].mxu1 }
 0x227   :  { %v280_v45 = vpop.f32.mrb[2].mxu1 }
 0x228   :  { %283 = vst [vmem:[#allocation9] sm:$0xff] %v278_v43  ;;  %v367_v46 = vpop.f32.mrb[3].mxu1 }
 0x229   :  { %488 = shalt.err (!%p485_p8)
}
 0x22a   :  { %s489_s5 = scalar_lea.hbm %s637_s6, 128 }
 0x22b   :  { %p490_p9 = scmp.ne.s32.totalorder %s637_s6, %s489_s5  ;;  %p493_p10 = scmp.lt.u32.totalorder %s489_s5, %s637_s6 }
 0x22d   :  { %p495_p11 = pnand %p493_p10, %p490_p9 }
 0x22f   :  { %498 = shalt.err (!%p495_p11)
}
 0x230   :  { %293 = dma.vmem_to_hbm [thread:$0]  %s291_s29, 128, %s637_s6, [#allocation5]  }
 0x231   :  { %503 = dma.done.wait [#allocation5], 128  }
 0x232   :  { %504 = vsyncadd [#allocation5], 4294967168 }
 0x233   :  { %505 = dma.done.wait [#allocation11], 128  }
 0x234   :  { %506 = vsyncadd [#allocation11], 4294967168 }
 0x235   :  { %310 = vsyncpa [#allocation4], 1 }
 0x236   :  { %311 = vsyncpa [#allocation7], 1 }
 0x237   :  { %312 = vsyncpa [#allocation5], 1 }
 0x238   :  { %313 = vsyncpa [#allocation11], 1 }

</bundles_post_ra>
